<compile_context>
chip_gen: v7x
topology: tpu7x:2x2x1
jax: 0.10.0
libtpu: 0.0.40
codegen_flags: <defaults>
</compile_context>

<pallas_src>
import jax
import jax.numpy as jnp
from jax.experimental import pallas as pl
from jax.experimental.pallas import tpu as pltpu


def mlp_kernel(x_ref, w1_ref, b1_ref, w2_ref, b2_ref, w3_ref, b3_ref, o_ref):
    """Fused fc1+ReLU -> fc2+ReLU -> fc3 on one batch tile.

    Weights arrive already in their matmul dtype (cast once at init, never per
    grid step).  MXU accumulation, bias add and ReLU stay in f32 (v5e VPU/EUP
    have no bf16 path).
    """
    cd = w1_ref.dtype                      # matmul operand dtype (f32 or bf16)
    x = x_ref[...].astype(cd)

    # fc_1 + ReLU
    h1 = jnp.dot(x, w1_ref[...], preferred_element_type=jnp.float32) + b1_ref[...]
    h1 = jnp.maximum(h1, 0.0)

    # fc_2 + ReLU
    h2 = (jnp.dot(h1.astype(cd), w2_ref[...], preferred_element_type=jnp.float32)
          + b2_ref[...])
    h2 = jnp.maximum(h2, 0.0)

    # fc_3 (no activation) -> narrow (TB, 2) output; masked store is fine here
    # (store slots have massive slack; this avoids 64x padded writeback).
    o_ref[...] = (jnp.dot(h2.astype(cd), w3_ref[...], preferred_element_type=jnp.float32)
                  + b3_ref[...]).astype(o_ref.dtype)


def prepare_weights(w1, b1, w2, b2, w3, b3, matmul_dtype=jnp.float32):
    """One-time cast of the matmul operands (weights) to the MXU dtype.

    Call this once at parameter-init time, not per forward call.  Biases stay
    f32 (they're added to the f32 accumulator).  matmul_dtype=bf16 roughly
    doubles MXU throughput on v5e; keep f32 if accuracy sign-off is pending
    (and loosen test tolerances if you flip it).
    """
    return (w1.astype(matmul_dtype), b1.astype(jnp.float32),
            w2.astype(matmul_dtype), b2.astype(jnp.float32),
            w3.astype(matmul_dtype), b3.astype(jnp.float32))


def agent_forward(x, w1, b1, w2, b2, w3, b3, *, batch_tile=1024):
    B, S = x.shape
    H = w1.shape[1]
    O = w3.shape[1]

    if B <= batch_tile:
        # --- Single-shot path: no grid, no pipelining scaffolding. ----------
        # Whole problem is far below VMEM capacity on v5e/v6e/v7x, so every
        # operand is simply pinned whole in VMEM for the kernel's duration.
        # For the small-B RL-loop regime, the win is at the call site: keep the
        # (already device-resident) weights around and fuse this pallas_call
        # into the surrounding jit / batch multiple env steps per call.
        return pl.pallas_call(
            mlp_kernel,
            out_shape=jax.ShapeDtypeStruct((B, O), jnp.float32),
            in_specs=[pl.BlockSpec(memory_space=pltpu.MemorySpace.VMEM)] * 7,
            out_specs=pl.BlockSpec(memory_space=pltpu.MemorySpace.VMEM),
        )(x, w1, b1, w2, b2, w3, b3)

    # --- Batched path: tile the batch, weights stay VMEM-resident. ----------
    # B > batch_tile here, so n_tiles >= 2 and both v7x TensorCores get work.
    # No wrapper-side padding: Pallas clamps/masks the partial tail block
    # (tail rows read unspecified data, their outputs are masked on write;
    # safe because rows are independent -- do NOT add cross-row reductions).
    TB = batch_tile
    n_tiles = pl.cdiv(B, TB)
    return pl.pallas_call(
        mlp_kernel,
        out_shape=jax.ShapeDtypeStruct((B, O), jnp.float32),
        grid=(n_tiles,),
        in_specs=[
            pl.BlockSpec((TB, S), lambda i: (i, 0)),   # x batch tile
            pl.BlockSpec((S, H), lambda i: (0, 0)),    # W1 (grid-resident)
            pl.BlockSpec((1, H), lambda i: (0, 0)),    # b1
            pl.BlockSpec((H, H), lambda i: (0, 0)),    # W2 (grid-resident)
            pl.BlockSpec((1, H), lambda i: (0, 0)),    # b2
            pl.BlockSpec((H, O), lambda i: (0, 0)),    # W3 (narrow, 2 cols)
            pl.BlockSpec((1, O), lambda i: (0, 0)),    # b3
        ],
        out_specs=pl.BlockSpec((TB, O), lambda i: (i, 0)),
        compiler_params=pltpu.CompilerParams(
            dimension_semantics=("parallel",)),  # shards batch tiles across TCs
    )(x, w1, b1, w2, b2, w3, b3)


def init_linear(key, in_features, out_features):
    """Deterministic init mimicking torch.nn.Linear (uniform +/- 1/sqrt(in))."""
    kw, kb = jax.random.split(key)
    bound = 1.0 / (in_features ** 0.5)
    # Stored as [in, out] (already transposed relative to PyTorch's [out, in]).
    w = jax.random.uniform(kw, (in_features, out_features), jnp.float32,
                           minval=-bound, maxval=bound)
    b = jax.random.uniform(kb, (1, out_features), jnp.float32,
                           minval=-bound, maxval=bound)
    return w, b


def reference_forward(x, w1, b1, w2, b2, w3, b3):
    h1 = jnp.maximum(x @ w1 + b1, 0.0)
    h2 = jnp.maximum(h1 @ w2 + b2, 0.0)
    return h2 @ w3 + b3


if __name__ == "__main__":
    STATE_SIZE = 16  # state_size
    HIDDEN = 32      # hidden_size
    OUT = 2          # fc_3 output (2 actions)

    key = jax.random.PRNGKey(0)
    kx, k1, k2, k3, kxb = jax.random.split(key, 5)

    w1, b1 = init_linear(k1, STATE_SIZE, HIDDEN)
    w2, b2 = init_linear(k2, HIDDEN, HIDDEN)
    w3, b3 = init_linear(k3, HIDDEN, OUT)
    # One-time weight prep (no-op casts in the default f32 path).
    params = prepare_weights(w1, b1, w2, b2, w3, b3, matmul_dtype=jnp.float32)

    fwd = jax.jit(agent_forward, static_argnames=("batch_tile",))

    # --- Small batch: single-shot (no grid) path ---------------------------
    B = 8
    x = jax.random.normal(kx, (B, STATE_SIZE), jnp.float32)
    out = jax.block_until_ready(fwd(x, *params))
    ref = reference_forward(x, w1, b1, w2, b2, w3, b3)
    assert out.shape == (B, OUT), out.shape
    assert jnp.allclose(out, ref, atol=1e-5, rtol=1e-5), \
        "mismatch vs reference (small batch)"

    # --- Larger batch: tiled 'parallel' grid path (partial tail block) ------
    # batch_tile lowered to 128 here only to exercise the tiled path and the
    # masked tail block (200 = 128 + 72) at small test shapes; production
    # default is 1024.
    BB = 200
    xb = jax.random.normal(kxb, (BB, STATE_SIZE), jnp.float32)
    outb = jax.block_until_ready(fwd(xb, *params, batch_tile=128))
    refb = reference_forward(xb, w1, b1, w2, b2, w3, b3)
    assert outb.shape == (BB, OUT), outb.shape
    assert jnp.allclose(outb, refb, atol=1e-5, rtol=1e-5), \
        "mismatch vs reference (batched)"

    print("KERNEL_OK")
</pallas_src>

<mosaic_0001>
module attributes {stable_mosaic.version = 11 : i64} {
  func.func @mlp_kernel(%arg0: memref<8x16xf32, #tpu.memory_space<vmem>>, %arg1: memref<16x32xf32, #tpu.memory_space<vmem>>, %arg2: memref<1x32xf32, #tpu.memory_space<vmem>>, %arg3: memref<32x32xf32, #tpu.memory_space<vmem>>, %arg4: memref<1x32xf32, #tpu.memory_space<vmem>>, %arg5: memref<32x2xf32, #tpu.memory_space<vmem>>, %arg6: memref<1x2xf32, #tpu.memory_space<vmem>>, %arg7: memref<8x2xf32, #tpu.memory_space<vmem>>) attributes {dimension_semantics = [], scalar_prefetch = 0 : i64, scratch_operands = 0 : i64, tpu.core_type = #tpu.core_type<tc>} {
    %c0 = arith.constant 0 : index
    %c0_0 = arith.constant 0 : index
    %0 = vector.load %arg0[%c0, %c0_0] : memref<8x16xf32, #tpu.memory_space<vmem>>, vector<8x16xf32>
    %c0_1 = arith.constant 0 : index
    %c0_2 = arith.constant 0 : index
    %1 = vector.load %arg1[%c0_1, %c0_2] : memref<16x32xf32, #tpu.memory_space<vmem>>, vector<16x32xf32>
    %cst = arith.constant dense<0.000000e+00> : vector<8x32xf32>
    %2 = tpu.matmul %0, %1, %cst {dimension_numbers = #tpu.dot_dimension_numbers<[1], [0], [0], [1], [0, 0, 1, 1], [], []>} : vector<8x16xf32>, vector<16x32xf32>, vector<8x32xf32> -> vector<8x32xf32>
    %c0_3 = arith.constant 0 : index
    %c0_4 = arith.constant 0 : index
    %3 = vector.load %arg2[%c0_3, %c0_4] : memref<1x32xf32, #tpu.memory_space<vmem>>, vector<1x32xf32>
    %4 = vector.broadcast %3 : vector<1x32xf32> to vector<8x32xf32>
    %5 = arith.addf %2, %4 : vector<8x32xf32>
    %cst_5 = arith.constant 0.000000e+00 : f32
    %6 = vector.broadcast %cst_5 : f32 to vector<8x32xf32>
    %7 = arith.maximumf %5, %6 : vector<8x32xf32>
    %c0_6 = arith.constant 0 : index
    %c0_7 = arith.constant 0 : index
    %8 = vector.load %arg3[%c0_6, %c0_7] : memref<32x32xf32, #tpu.memory_space<vmem>>, vector<32x32xf32>
    %cst_8 = arith.constant dense<0.000000e+00> : vector<8x32xf32>
    %9 = tpu.matmul %7, %8, %cst_8 {dimension_numbers = #tpu.dot_dimension_numbers<[1], [0], [0], [1], [0, 0, 1, 1], [], []>} : vector<8x32xf32>, vector<32x32xf32>, vector<8x32xf32> -> vector<8x32xf32>
    %c0_9 = arith.constant 0 : index
    %c0_10 = arith.constant 0 : index
    %10 = vector.load %arg4[%c0_9, %c0_10] : memref<1x32xf32, #tpu.memory_space<vmem>>, vector<1x32xf32>
    %11 = vector.broadcast %10 : vector<1x32xf32> to vector<8x32xf32>
    %12 = arith.addf %9, %11 : vector<8x32xf32>
    %cst_11 = arith.constant 0.000000e+00 : f32
    %13 = vector.broadcast %cst_11 : f32 to vector<8x32xf32>
    %14 = arith.maximumf %12, %13 : vector<8x32xf32>
    %c0_12 = arith.constant 0 : index
    %c0_13 = arith.constant 0 : index
    %15 = vector.load %arg5[%c0_12, %c0_13] : memref<32x2xf32, #tpu.memory_space<vmem>>, vector<32x2xf32>
    %cst_14 = arith.constant dense<0.000000e+00> : vector<8x2xf32>
    %16 = tpu.matmul %14, %15, %cst_14 {dimension_numbers = #tpu.dot_dimension_numbers<[1], [0], [0], [1], [0, 0, 1, 1], [], []>} : vector<8x32xf32>, vector<32x2xf32>, vector<8x2xf32> -> vector<8x2xf32>
    %c0_15 = arith.constant 0 : index
    %c0_16 = arith.constant 0 : index
    %17 = vector.load %arg6[%c0_15, %c0_16] : memref<1x2xf32, #tpu.memory_space<vmem>>, vector<1x2xf32>
    %18 = vector.broadcast %17 : vector<1x2xf32> to vector<8x2xf32>
    %19 = arith.addf %16, %18 : vector<8x2xf32>
    %c0_17 = arith.constant 0 : index
    %c0_18 = arith.constant 0 : index
    %20 = vector.load %arg7[%c0_17, %c0_18] : memref<8x2xf32, #tpu.memory_space<vmem>>, vector<8x2xf32>
    tpu.vector_store %arg7[%c0_17, %c0_18], %19 {strides = array<i32>} : memref<8x2xf32, #tpu.memory_space<vmem>>, vector<8x2xf32>,
    return
  }
}

</mosaic_0001>

<bundles_post_ra>
// kernel: agent_forward.1
= control target key start
LH: loop header
LB: loop body
LE: loop exit
PB: predicated region body
PF: predicated region fallthrough
CT: control target
= control target key end

     0   :  { %12 = vsyncpa [#allocation3], 0  ;;  %s395_s24 = smov [#allocation2]   ;;  %s495_s0 = inlined_call_operand.vmem [shape: f32[8,16], index: 0, kind: input, shape index: {}]   ;;  %s496_s1 = inlined_call_operand.hbm [shape: f32[16,32], index: 1, kind: input, shape index: {}]   ;;  %s497_s2 = inlined_call_operand.vmem [shape: f32[1,32], index: 2, kind: input, shape index: {}]   ;;  %s498_s3 = inlined_call_operand.vmem [shape: f32[32,32], index: 3, kind: input, shape index: {}]   ;;  %s499_s4 = inlined_call_operand.vmem [shape: f32[1,32], index: 4, kind: input, shape index: {}]   ;;  %s500_s5 = inlined_call_operand.vmem [shape: f32[32,2], index: 5, kind: input, shape index: {}]   ;;  %s501_s6 = inlined_call_operand.vmem [shape: f32[1,2], index: 6, kind: input, shape index: {}]   ;;  %s502_s7 = inlined_call_operand.vmem [shape: f32[8,2], index: 7, kind: output, shape index: {}]  }
   0x1   :  { %s20_s25 = sshll.u32 %s395_s24, 4  ;;  %s371_s28 = scalar_lea.hbm %s496_s1, 256  ;;  %s21_s25 = int_to_ptr.vmem [resolvable:$true] %s20_s25 }
   0x2   :  { %p372_p0 = scmp.ne.s32.totalorder %s496_s1, %s371_s28  ;;  %p375_p1 = scmp.lt.u32.totalorder %s371_s28, %s496_s1 }
   0x4   :  { %p377_p2 = pnand %p375_p1, %p372_p0 }
   0x6   :  { %380 = shalt.err (!%p377_p2)
}
   0x7   :  { %s381_s10 = scalar_lea.vmem %s21_s25, 256  ;;  %p386_p4 = scmp.lt.s32.totalorder %s21_s25, %s21_s25 }
   0x8   :  { %p382_p3 = scmp.ne.s32.totalorder %s21_s25, %s381_s10  ;;  %p387_p5 = scmp.lt.s32.totalorder %s381_s10, %s381_s10 }
   0xa   :  { %p388_p6 = por %p387_p5, %p386_p4 }
   0xc   :  { %p389_p7 = pnand %p388_p6, %p382_p3 }
   0xe   :  { %392 = shalt.err (!%p389_p7)
}
   0xf   :  { %s396_s11 = smov 128   ;;  %s397_s12 = smov 8  }
  0x10   :  { %26 = dma.hbm_to_vmem [thread:$0]  %s496_s1, 256, %s21_s25, [#allocation3], %s396_s11, %s396_s11, %s397_s12  }
  0x11   :  { %393 = dma.done.wait [#allocation3], 256  }
  0x12   :  { %394 = vsyncadd [#allocation3], 4294967040  ;;  %v398_v0 = vmov 0.0|0.0   ;;  %vm399_vm0 = vmmov 0   ;;  %v400_v1 = vmov 0.0   ;;  %v41_v2 = vld [vmem:[#allocation2] sm:$0xff] }
  0x13   :  { %350 = vmatprep.subr.bf16.mxu0 %v398_v0  ;;  %325 = vmatprep.mubr.msk.f32.mxu0 %vm399_vm0, %v400_v1  ;;  %v42_v3 = vld [vmem:[#allocation2 + $0x8] sm:$0xff]  ;;  %v125_v5 = vld [vmem:[%s498_s3] sm:$0xff]  ;;  %vm50_vm1 = vcmask 130048   ;;  %v127_v9 = vld [vmem:[%s498_s3 + $0x10] sm:$0xff]  ;;  %vm136_vm2 = vcmask 261120   ;;  %vm295_vm3 = vcmask 15360  }
  0x14   :  { %353 = vmatprep.subr.bf16.mxu1 %v398_v0  ;;  %336 = vmatprep.mubr.msk.f32.mxu1 %vm399_vm0, %v400_v1  ;;  %v351_v4 = vpack.c.bf16 %v42_v3, %v41_v2  ;;  %v126_v6 = vld [vmem:[%s498_s3 + $0x8] sm:$0xff]  ;;  %v40_v8 = vld [vmem:[%s495_s0] sm:$0xff]  ;;  %v128_v10 = vld [vmem:[%s498_s3 + $0x18] sm:$0xff] }
  0x15   :  { %v354_v7 = vpack.c.bf16 %v126_v6, %v125_v5  ;;  %v357_v11 = vpack.c.bf16 %v128_v10, %v127_v9  ;;  %v211_v12 = vld [vmem:[%s500_s5] sm:$0xff]  ;;  %v212_v13 = vld [vmem:[%s500_s5 + $0x8] sm:$0xff]  ;;  %v213_v20 = vld [vmem:[%s500_s5 + $0x10] sm:$0xff] }
  0x16   :  { %352 = vmatpush3.bf16.msra.mxu0 %v351_v4  ;;  %v360_v14 = vpack.c.bf16 %v212_v13, %v211_v12  ;;  %v302_v15 = vld [vmem:[%s497_s2] ss:$0 sm:$0xff]  ;;  %v214_v21 = vld [vmem:[%s500_s5 + $0x18] sm:$0xff] }
  0x17   :  { %355 = vmatpush3.bf16.msra.mxu1 %v354_v7  ;;  %359 = vmatprep.subr.bf16.mxu0 %v398_v0  ;;  %v363_v22 = vpack.c.bf16 %v214_v21, %v213_v20  ;;  %v304_v23 = vld [vmem:[%s499_s4] ss:$0 sm:$0xff] }
  0x18   :  { %356 = vmatprep.subr.bf16.mxu1 %v398_v0  ;;  %v306_v28 = vld [vmem:[%s501_s6] ss:$0 sm:$0xff] }
  0x19   :  { %326 = vmatmul.mubr.msk.f32.vlgmr.msra.gmra.mrb[0].mxu0 %vm50_vm1, %v40_v8 }
  0x1a   :  { %347 = vmatprep.mubr.msk.f32.mxu0 %vm399_vm0, %v400_v1  ;;  %361 = vmatpush3.bf16.msra.mxu0 %v360_v14 }
  0x1b   :  { %358 = vmatpush3.bf16.msra.mxu1 %v357_v11  ;;  %362 = vmatprep.subr.bf16.mxu0 %v398_v0 }
  0x1e   :  { %364 = vmatpush3.bf16.msra.mxu0 %v363_v22 }
  0xec   :  { %v120_v16 = vpop.f32.mrb[0].mxu0 }
  0xed   :  { %v121_v17 = vadd.f32 %v302_v15, %v120_v16  ;;  %v327_v18 = vpop.f32.mrb[1].mxu0 }
  0xef   :  { %v124_v19 = vmax.f32 %v121_v17, 0.0 }
  0xf1   :  { %337 = vmatmul.mubr.msk.f32.vlgmr.msra.gmra.mrb[0].mxu1 %vm136_vm2, %v124_v19 }
 0x1c4   :  { %v206_v24 = vpop.f32.mrb[0].mxu1 }
 0x1c5   :  { %v207_v25 = vadd.f32 %v304_v23, %v206_v24  ;;  %v338_v26 = vpop.f32.mrb[1].mxu1 }
 0x1c7   :  { %v210_v27 = vmax.f32 %v207_v25, 0.0 }
 0x1c9   :  { %348 = vmatmul.mubr.msk.f32.vlgmr.msra.gmra.mrb[2].mxu0 %vm136_vm2, %v210_v27 }
 0x29c   :  { %v291_v29 = vpop.f32.mrb[2].mxu0 }
 0x29d   :  { %v292_v30 = vadd.f32 %v306_v28, %v291_v29  ;;  %v349_v31 = vpop.f32.mrb[3].mxu0 }
 0x29f   :  { %296 = vst.msk [vmem:[%s502_s7] sm:$0xff] %vm295_vm3, %v292_v30 }
 0x2a0   :  { %301 = vsyncpa [#allocation3], 1 }

</bundles_post_ra>
